<compile_context>
chip_gen: v7x
topology: tpu7x:2x2x1
jax: 0.10.0
libtpu: 0.0.40
codegen_flags: <defaults>
</compile_context>

<pallas_src>
import jax
import jax.numpy as jnp
from jax.experimental import pallas as pl
from jax.experimental.pallas import tpu as pltpu


def _round_up(n, m):
    return ((n + m - 1) // m) * m


def _vmem_capacity_bytes():
    try:
        return int(pltpu.get_tpu_info().vmem_capacity_bytes)
    except Exception:
        return 64 * 1024 * 1024  # conservative (v7x per-TC physical VMEM)


# ----------------------------------------------------------------------------
# Kernels
# ----------------------------------------------------------------------------
def _mlp_resident_kernel(x_ref, w_ref, b_ref, o_ref):
    """Resident-weight mode: grid = (batch_tiles,), layers unrolled in-kernel.

    x_ref: (TB, Hp)      bf16 input batch tile
    w_ref: (L, Hp, Hp)   bf16 weight stack, (in, out) layout, VMEM-resident
    b_ref: (L, 1, Hp)    f32 biases, VMEM-resident
    o_ref: (TB, Hp)      output tile
    """
    num_layers = w_ref.shape[0]
    h = x_ref[...]                      # bf16 MXU operand
    y = None
    for l in range(num_layers):         # static unroll (L is small/known)
        y = jnp.dot(h, w_ref[l], preferred_element_type=jnp.float32)
        y = jnp.maximum(y + b_ref[l], 0.0)   # bias + ReLU in f32 (VPU)
        # dropout: identity (eval mode / p = 0)
        h = y.astype(jnp.bfloat16)
    o_ref[...] = y.astype(o_ref.dtype)


def _mlp_streamed_kernel(x_ref, w_ref, b_ref, o_ref, h_ref):
    """Layer-streamed mode: grid = (batch_tiles, L); one weight tile per step.

    x_ref: (TB, Hp)      bf16 input batch tile (consumed at layer 0 only)
    w_ref: (1, Hp, Hp)   this layer's bf16 weight (double-buffered DMA)
    b_ref: (1, 1, Hp)    this layer's f32 bias
    o_ref: (TB, Hp)      output tile (resident across the layer axis)
    h_ref: (TB, Hp)      bf16 VMEM scratch carrying the activation
    """
    l = pl.program_id(1)
    last = pl.num_programs(1) - 1

    def layer_and_store(lhs):
        y = jnp.dot(lhs, w_ref[0], preferred_element_type=jnp.float32)
        y = jnp.maximum(y + b_ref[0], 0.0)
        # dropout: identity (eval mode / p = 0)
        h_ref[...] = y.astype(jnp.bfloat16)

        @pl.when(l == last)
        def _():
            o_ref[...] = y.astype(o_ref.dtype)   # f32 result, no bf16 round-trip

    @pl.when(l == 0)
    def _():
        layer_and_store(x_ref[...])              # layer 0 reads x directly

    @pl.when(l > 0)
    def _():
        layer_and_store(h_ref[...])


# ----------------------------------------------------------------------------
# Wrapper
# ----------------------------------------------------------------------------
def _mlp_forward(x, w_p, b_p, *, true_h, batch_tile, vmem_cap):
    """x: (B, H) -> (B, H).  w_p/b_p are pre-padded/pre-cast (see make_mlp_block)."""
    B = x.shape[0]
    L, Hp, _ = w_p.shape

    budget = int(0.85 * vmem_cap)

    # Batch tile: 512 default (multiple of 8), capped by B and by VMEM.
    if batch_tile is None:
        batch_tile = 512 if B >= 512 else _round_up(B, 8)
    TB = _round_up(min(batch_tile, _round_up(B, 8)), 8)

    def act_bytes(tb):
        # double-buffered x (bf16) + o (f32) tiles + bf16 h scratch + f32 live values
        return 2 * tb * Hp * 2 + 2 * tb * Hp * 4 + tb * Hp * 2 + 3 * tb * Hp * 4

    while TB > 8 and act_bytes(TB) > budget // 2:
        TB = max(8, _round_up(TB // 2, 8))

    Bp = _round_up(B, TB)
    num_tiles = Bp // TB

    bias_bytes = 2 * L * Hp * 4
    resident_need = 2 * (L * Hp * Hp * 2) + bias_bytes + act_bytes(TB)
    streamed_need = 2 * (Hp * Hp * 2) + bias_bytes + act_bytes(TB)
    # TODO(synk): for Hp large enough that even one double-buffered (Hp, Hp)
    # weight tile exceeds the budget (v7x, Hp >= ~4096), add an output-feature
    # grid axis (weight block (1, Hp, TN)) with an h ping-pong scratch.

    use_resident = resident_need <= budget
    need = resident_need if use_resident else streamed_need
    vmem_limit = min(max(32 * 1024 * 1024, int(need * 1.25)), budget)

    # Input padded + pre-cast to bf16 (zero padding is exact under Linear->ReLU
    # because padded weight rows/cols and biases are zero).
    x_p = jnp.zeros((Bp, Hp), jnp.bfloat16).at[:B, :true_h].set(
        x.astype(jnp.bfloat16))

    if use_resident:
        out = pl.pallas_call(
            _mlp_resident_kernel,
            out_shape=jax.ShapeDtypeStruct((Bp, Hp), x.dtype),
            grid=(num_tiles,),
            in_specs=[
                pl.BlockSpec((TB, Hp), lambda i: (i, 0)),         # x per tile
                pl.BlockSpec((L, Hp, Hp), lambda i: (0, 0, 0)),   # weights resident
                pl.BlockSpec((L, 1, Hp), lambda i: (0, 0, 0)),    # biases resident
            ],
            out_specs=pl.BlockSpec((TB, Hp), lambda i: (i, 0)),
            compiler_params=pltpu.CompilerParams(
                dimension_semantics=("parallel",),
                vmem_limit_bytes=vmem_limit),
        )(x_p, w_p, b_p)
    else:
        out = pl.pallas_call(
            _mlp_streamed_kernel,
            out_shape=jax.ShapeDtypeStruct((Bp, Hp), x.dtype),
            grid=(num_tiles, L),
            in_specs=[
                pl.BlockSpec((TB, Hp), lambda i, l: (i, 0)),        # x per tile
                pl.BlockSpec((1, Hp, Hp), lambda i, l: (l, 0, 0)),  # weights per layer
                pl.BlockSpec((1, 1, Hp), lambda i, l: (l, 0, 0)),   # bias per layer
            ],
            out_specs=pl.BlockSpec((TB, Hp), lambda i, l: (i, 0)),
            scratch_shapes=[pltpu.VMEM((TB, Hp), jnp.bfloat16)],
            compiler_params=pltpu.CompilerParams(
                dimension_semantics=("parallel", "arbitrary"),
                vmem_limit_bytes=vmem_limit),
        )(x_p, w_p, b_p)

    return out[:B, :true_h]


def make_mlp_block(w_stack, b_stack, *, batch_tile=None):
    """Build a jitted MLPBlock forward with weights pre-padded/pre-cast ONCE.

    w_stack: (L, H, H) weights already transposed to (in, out) layout
    b_stack: (L, H)    biases
    Returns: forward(x: (B, H) f32) -> (B, H)
    """
    L, H, _ = w_stack.shape
    Hp = _round_up(max(H, 128), 128)

    # One-time padding + bf16 cast (done at init, NOT per call).
    w_p = jnp.zeros((L, Hp, Hp), jnp.bfloat16).at[:, :H, :H].set(
        w_stack.astype(jnp.bfloat16))
    b_p = jnp.zeros((L, 1, Hp), jnp.float32).at[:, 0, :H].set(
        b_stack.astype(jnp.float32))
    w_p, b_p = jax.device_put(w_p), jax.device_put(b_p)

    vmem_cap = _vmem_capacity_bytes()

    @jax.jit
    def forward(x):
        return _mlp_forward(x, w_p, b_p, true_h=H, batch_tile=batch_tile,
                            vmem_cap=vmem_cap)

    return forward


# ----------------------------------------------------------------------------
# Test
# ----------------------------------------------------------------------------
if __name__ == "__main__":
    # Small shapes consistent with MLPBlock(layers=3, layer_size=32, ...)
    LAYERS = 3
    LAYER_SIZE = 32
    BATCH = 8

    key = jax.random.PRNGKey(0)
    kx, kw, kb = jax.random.split(key, 3)

    x = jax.random.normal(kx, (BATCH, LAYER_SIZE), dtype=jnp.float32)

    # Deterministic init mimicking nn.Linear's uniform(-1/sqrt(in), 1/sqrt(in)).
    bound = 1.0 / jnp.sqrt(jnp.float32(LAYER_SIZE))
    w_pt = jax.random.uniform(kw, (LAYERS, LAYER_SIZE, LAYER_SIZE),
                              dtype=jnp.float32, minval=-bound, maxval=bound)
    b_pt = jax.random.uniform(kb, (LAYERS, LAYER_SIZE),
                              dtype=jnp.float32, minval=-bound, maxval=bound)

    w_stack = jnp.transpose(w_pt, (0, 2, 1))   # (L, in, out)
    b_stack = b_pt                             # (L, H)

    forward = make_mlp_block(w_stack, b_stack)
    out = jax.block_until_ready(forward(x))
    assert out.shape == (BATCH, LAYER_SIZE)

    # Reference A: same numerics as the kernel (bf16 operands, f32 accumulate,
    # bf16 activation carry, f32 final output).
    def ref_bf16(x, w, b):
        h = x.astype(jnp.bfloat16)
        y = None
        for l in range(w.shape[0]):
            y = jnp.dot(h, w[l].astype(jnp.bfloat16),
                        preferred_element_type=jnp.float32) + b[l]
            y = jnp.maximum(y, 0.0)
            h = y.astype(jnp.bfloat16)
        return y

    # Reference B: pure f32 (PyTorch-semantics oracle, loose tolerance).
    def ref_f32(x, w, b):
        h = x
        for l in range(w.shape[0]):
            h = jnp.maximum(h @ w[l] + b[l], 0.0)
        return h

    assert jnp.allclose(out, ref_bf16(x, w_stack, b_stack),
                        atol=2e-3, rtol=2e-3), "mismatch vs bf16 reference"
    assert jnp.allclose(out, ref_f32(x, w_stack, b_stack),
                        atol=5e-2, rtol=5e-2), "mismatch vs f32 reference"

    # TODO(synk): training-mode dropout (pltpu.prng_seed + stateful_bernoulli)
    # is not implemented; this kernel is eval-mode (dropout = identity).

    print("KERNEL_OK")
</pallas_src>

<mosaic_0001>
module attributes {stable_mosaic.version = 11 : i64} {
  func.func @_mlp_resident_kernel(%arg0: i32, %arg1: memref<8x128xbf16, #tpu.memory_space<vmem>>, %arg2: memref<3x128x128xbf16, #tpu.memory_space<vmem>>, %arg3: memref<3x1x128xf32, #tpu.memory_space<vmem>>, %arg4: memref<8x128xf32, #tpu.memory_space<vmem>>) attributes {dimension_semantics = [#tpu.dimension_semantics<parallel>], iteration_bounds = array<i64: 1>, scalar_prefetch = 0 : i64, scratch_operands = 0 : i64, tpu.core_type = #tpu.core_type<tc>, window_params = [{transform_indices = @transform_0, window_bounds = array<i64: 8, 128>}, {pipeline_mode = #tpu.pipeline_mode<synchronous>, transform_indices = @transform_1, window_bounds = array<i64: 3, 128, 128>}, {pipeline_mode = #tpu.pipeline_mode<synchronous>, transform_indices = @transform_2, window_bounds = array<i64: 3, 1, 128>}, {transform_indices = @transform_3, window_bounds = array<i64: 8, 128>}]} {
    %c0 = arith.constant 0 : index
    %c0_0 = arith.constant 0 : index
    %0 = vector.load %arg1[%c0, %c0_0] : memref<8x128xbf16, #tpu.memory_space<vmem>>, vector<8x128xbf16>
    %c0_1 = arith.constant 0 : index
    %c0_2 = arith.constant 0 : index
    %c0_3 = arith.constant 0 : index
    %1 = vector.load %arg2[%c0_1, %c0_2, %c0_3] : memref<3x128x128xbf16, #tpu.memory_space<vmem>>, vector<1x128x128xbf16>
    %2 = vector.shape_cast %1 : vector<1x128x128xbf16> to vector<128x128xbf16>
    %cst = arith.constant dense<0.000000e+00> : vector<8x128xf32>
    %3 = tpu.matmul %0, %2, %cst {dimension_numbers = #tpu.dot_dimension_numbers<[1], [0], [0], [1], [0, 0, 1, 1], [], []>} : vector<8x128xbf16>, vector<128x128xbf16>, vector<8x128xf32> -> vector<8x128xf32>
    %c0_4 = arith.constant 0 : index
    %c0_5 = arith.constant 0 : index
    %c0_6 = arith.constant 0 : index
    %4 = vector.load %arg3[%c0_4, %c0_5, %c0_6] : memref<3x1x128xf32, #tpu.memory_space<vmem>>, vector<1x1x128xf32>
    %5 = vector.shape_cast %4 : vector<1x1x128xf32> to vector<1x128xf32>
    %6 = vector.broadcast %5 : vector<1x128xf32> to vector<8x128xf32>
    %7 = arith.addf %3, %6 : vector<8x128xf32>
    %cst_7 = arith.constant 0.000000e+00 : f32
    %8 = vector.broadcast %cst_7 : f32 to vector<8x128xf32>
    %9 = arith.maximumf %7, %8 : vector<8x128xf32>
    %10 = arith.truncf %9 : vector<8x128xf32> to vector<8x128xbf16>
    %c1 = arith.constant 1 : index
    %c0_8 = arith.constant 0 : index
    %c0_9 = arith.constant 0 : index
    %11 = vector.load %arg2[%c1, %c0_8, %c0_9] : memref<3x128x128xbf16, #tpu.memory_space<vmem>>, vector<1x128x128xbf16>
    %12 = vector.shape_cast %11 : vector<1x128x128xbf16> to vector<128x128xbf16>
    %cst_10 = arith.constant dense<0.000000e+00> : vector<8x128xf32>
    %13 = tpu.matmul %10, %12, %cst_10 {dimension_numbers = #tpu.dot_dimension_numbers<[1], [0], [0], [1], [0, 0, 1, 1], [], []>} : vector<8x128xbf16>, vector<128x128xbf16>, vector<8x128xf32> -> vector<8x128xf32>
    %c1_11 = arith.constant 1 : index
    %c0_12 = arith.constant 0 : index
    %c0_13 = arith.constant 0 : index
    %14 = vector.load %arg3[%c1_11, %c0_12, %c0_13] : memref<3x1x128xf32, #tpu.memory_space<vmem>>, vector<1x1x128xf32>
    %15 = vector.shape_cast %14 : vector<1x1x128xf32> to vector<1x128xf32>
    %16 = vector.broadcast %15 : vector<1x128xf32> to vector<8x128xf32>
    %17 = arith.addf %13, %16 : vector<8x128xf32>
    %cst_14 = arith.constant 0.000000e+00 : f32
    %18 = vector.broadcast %cst_14 : f32 to vector<8x128xf32>
    %19 = arith.maximumf %17, %18 : vector<8x128xf32>
    %20 = arith.truncf %19 : vector<8x128xf32> to vector<8x128xbf16>
    %c2 = arith.constant 2 : index
    %c0_15 = arith.constant 0 : index
    %c0_16 = arith.constant 0 : index
    %21 = vector.load %arg2[%c2, %c0_15, %c0_16] : memref<3x128x128xbf16, #tpu.memory_space<vmem>>, vector<1x128x128xbf16>
    %22 = vector.shape_cast %21 : vector<1x128x128xbf16> to vector<128x128xbf16>
    %cst_17 = arith.constant dense<0.000000e+00> : vector<8x128xf32>
    %23 = tpu.matmul %20, %22, %cst_17 {dimension_numbers = #tpu.dot_dimension_numbers<[1], [0], [0], [1], [0, 0, 1, 1], [], []>} : vector<8x128xbf16>, vector<128x128xbf16>, vector<8x128xf32> -> vector<8x128xf32>
    %c2_18 = arith.constant 2 : index
    %c0_19 = arith.constant 0 : index
    %c0_20 = arith.constant 0 : index
    %24 = vector.load %arg3[%c2_18, %c0_19, %c0_20] : memref<3x1x128xf32, #tpu.memory_space<vmem>>, vector<1x1x128xf32>
    %25 = vector.shape_cast %24 : vector<1x1x128xf32> to vector<1x128xf32>
    %26 = vector.broadcast %25 : vector<1x128xf32> to vector<8x128xf32>
    %27 = arith.addf %23, %26 : vector<8x128xf32>
    %cst_21 = arith.constant 0.000000e+00 : f32
    %28 = vector.broadcast %cst_21 : f32 to vector<8x128xf32>
    %29 = arith.maximumf %27, %28 : vector<8x128xf32>
    %c0_22 = arith.constant 0 : index
    %c0_23 = arith.constant 0 : index
    %30 = vector.load %arg4[%c0_22, %c0_23] : memref<8x128xf32, #tpu.memory_space<vmem>>, vector<8x128xf32>
    tpu.vector_store %arg4[%c0_22, %c0_23], %29 {strides = array<i32>} : memref<8x128xf32, #tpu.memory_space<vmem>>, vector<8x128xf32>,
    return
  }
  func.func @transform_0(%arg0: i32) -> (i32, i32) {
    %c0_i32 = arith.constant 0 : i32
    %c0_i32_0 = arith.constant 0 : i32
    return %arg0, %c0_i32 : i32, i32
  }
  func.func @transform_1(%arg0: i32) -> (i32, i32, i32) {
    %c0_i32 = arith.constant 0 : i32
    %c0_i32_0 = arith.constant 0 : i32
    %c0_i32_1 = arith.constant 0 : i32
    %c0_i32_2 = arith.constant 0 : i32
    return %c0_i32, %c0_i32_0, %c0_i32_1 : i32, i32, i32
  }
  func.func @transform_2(%arg0: i32) -> (i32, i32, i32) {
    %c0_i32 = arith.constant 0 : i32
    %c0_i32_0 = arith.constant 0 : i32
    %c0_i32_1 = arith.constant 0 : i32
    %c0_i32_2 = arith.constant 0 : i32
    return %c0_i32, %c0_i32_0, %c0_i32_1 : i32, i32, i32
  }
  func.func @transform_3(%arg0: i32) -> (i32, i32) {
    %c0_i32 = arith.constant 0 : i32
    %c0_i32_0 = arith.constant 0 : i32
    return %arg0, %c0_i32 : i32, i32
  }
}

</mosaic_0001>

<bundles_post_ra>
// kernel: forward.1
= control target key start
LH: loop header
LB: loop body
LE: loop exit
PB: predicated region body
PF: predicated region fallthrough
CT: control target
= control target key end

     0   :  { %8 = vsyncpa [#allocation3], 0  ;;  %s675_s0 = inlined_call_operand.vmem [shape: bf16[8,128], index: 0, kind: input, shape index: {}]   ;;  %s676_s1 = inlined_call_operand.hbm [shape: bf16[3,128,128], index: 1, kind: input, shape index: {}]   ;;  %s677_s2 = inlined_call_operand.vmem [shape: f32[3,1,128], index: 2, kind: input, shape index: {}]   ;;  %s678_s3 = inlined_call_operand.hbm [shape: f32[8,128], index: 3, kind: output, shape index: {}]  }
   0x1   :  { %9 = vsyncpa [#allocation4], 0  ;;  %s583_s12 = smov [#allocation2]   ;;  %s535_s16 = scalar_lea.hbm %s676_s1, 3072 }
   0x2   :  { %s17_s13 = sshll.u32 %s583_s12, 4  ;;  %p536_p0 = scmp.ne.s32.totalorder %s676_s1, %s535_s16  ;;  %s18_s13 = int_to_ptr.vmem [resolvable:$true] %s17_s13 }
   0x3   :  { %p539_p1 = scmp.lt.u32.totalorder %s535_s16, %s676_s1 }
   0x5   :  { %p541_p2 = pnand %p539_p1, %p536_p0 }
   0x7   :  { %544 = shalt.err (!%p541_p2)
}
   0x8   :  { %s545_s21 = scalar_lea.vmem %s18_s13, 3072  ;;  %p550_p4 = scmp.lt.s32.totalorder %s18_s13, %s18_s13 }
   0x9   :  { %p546_p3 = scmp.ne.s32.totalorder %s18_s13, %s545_s21  ;;  %p551_p5 = scmp.lt.s32.totalorder %s545_s21, %s545_s21 }
   0xb   :  { %p552_p6 = por %p551_p5, %p550_p4 }
   0xd   :  { %p553_p7 = pnand %p552_p6, %p546_p3 }
   0xf   :  { %556 = shalt.err (!%p553_p7)
}
  0x10   :  { %s584_s22 = smov 64   ;;  %s585_s23 = smov 4  }
  0x11   :  { %23 = dma.hbm_to_vmem [thread:$0]  %s676_s1, 3072, %s18_s13, [#allocation3], %s584_s22, %s584_s22, %s585_s23  }
  0x12   :  { %579 = dma.done.wait [#allocation3], 3072  }
  0x13   :  { %580 = vsyncadd [#allocation3], 4294964224  ;;  %v586_v0 = vmov 0.0   ;;  %vm587_vm0 = vmmov 0   ;;  %v511_v1 = vld [vmem:[#allocation2] sm:$0xff]   ;;  %v512_v2 = vld [vmem:[#allocation2 + $0x8] sm:$0xff]  }
  0x14   :  { %445 = vmatprep.subr.bf16.mxu0 %v586_v0  ;;  %461 = vmatprep.mubr.msk.bf16.mxu0 %vm587_vm0, %v586_v0  ;;  %v513_v3 = vld [vmem:[#allocation2 + $0x10] sm:$0xff]   ;;  %v519_v4 = vld [vmem:[#allocation2 + $0x40] sm:$0xff]   ;;  %v514_v5 = vld [vmem:[#allocation2 + $0x18] sm:$0xff]   ;;  %s588_s5 = smov [#allocation5]  }
  0x15   :  { %465 = vmatprep.subr.bf16.mxu1 %v586_v0  ;;  %481 = vmatprep.mubr.msk.bf16.mxu1 %vm587_vm0, %v586_v0  ;;  %v520_v6 = vld [vmem:[#allocation2 + $0x48] sm:$0xff]   ;;  %v515_v7 = vld [vmem:[#allocation2 + $0x20] sm:$0xff]   ;;  %v521_v8 = vld [vmem:[#allocation2 + $0x50] sm:$0xff]   ;;  %s380_s6 = sshll.u32 %s588_s5, 4  ;;  %s381_s6 = int_to_ptr.vmem [resolvable:$true] %s380_s6 }
  0x16   :  { %446 = vmatpush3.bf16.msra.mxu0 %v511_v1  ;;  %466 = vmatpush3.bf16.msra.mxu1 %v519_v4  ;;  %v516_v9 = vld [vmem:[#allocation2 + $0x28] sm:$0xff]   ;;  %v522_v10 = vld [vmem:[#allocation2 + $0x58] sm:$0xff]   ;;  %v517_v11 = vld [vmem:[#allocation2 + $0x30] sm:$0xff]   ;;  %s557_s7 = scalar_lea.vmem %s381_s6, 128  ;;  %p562_p9 = scmp.lt.s32.totalorder %s381_s6, %s381_s6 }
  0x17   :  { %447 = vmatprep.subr.bf16.mxu0 %v586_v0  ;;  %467 = vmatprep.subr.bf16.mxu1 %v586_v0  ;;  %v523_v12 = vld [vmem:[#allocation2 + $0x60] sm:$0xff]   ;;  %v518_v13 = vld [vmem:[#allocation2 + $0x38] sm:$0xff]   ;;  %v524_v14 = vld [vmem:[#allocation2 + $0x68] sm:$0xff]   ;;  %p558_p8 = scmp.ne.s32.totalorder %s381_s6, %s557_s7  ;;  %p563_p10 = scmp.lt.s32.totalorder %s557_s7, %s557_s7 }
  0x18   :  { %v30_v15 = vld [vmem:[%s675_s0] sm:$0xf]  ;;  %v525_v16 = vld [vmem:[#allocation2 + $0x70] sm:$0xff]   ;;  %v526_v17 = vld [vmem:[#allocation2 + $0x78] sm:$0xff]  }
  0x19   :  { %v527_v18 = vld [vmem:[#allocation2 + $0x80] sm:$0xff]   ;;  %v528_v19 = vld [vmem:[#allocation2 + $0x88] sm:$0xff]   ;;  %v529_v20 = vld [vmem:[#allocation2 + $0x90] sm:$0xff]   ;;  %p564_p11 = por %p563_p10, %p562_p9 }
  0x1a   :  { %448 = vmatpush3.bf16.msra.mxu0 %v512_v2  ;;  %468 = vmatpush3.bf16.msra.mxu1 %v520_v6  ;;  %v530_v21 = vld [vmem:[#allocation2 + $0x98] sm:$0xff]   ;;  %v531_v22 = vld [vmem:[#allocation2 + $0xa0] sm:$0xff]   ;;  %v532_v23 = vld [vmem:[#allocation2 + $0xa8] sm:$0xff]  }
  0x1b   :  { %449 = vmatprep.subr.bf16.mxu0 %v586_v0  ;;  %469 = vmatprep.subr.bf16.mxu1 %v586_v0  ;;  %v389_v24 = vld [vmem:[%s677_s2] ss:$0 sm:$0xff]  ;;  %v533_v32 = vld [vmem:[#allocation2 + $0xb0] sm:$0xff]   ;;  %v534_v33 = vld [vmem:[#allocation2 + $0xb8] sm:$0xff]   ;;  %p565_p12 = pnand %p564_p11, %p558_p8 }
  0x1c   :  { %v399_v34 = vld [vmem:[%s677_s2 + $0x1] ss:$0 sm:$0xff]  ;;  %v409_v42 = vld [vmem:[%s677_s2 + $0x2] ss:$0 sm:$0xff] }
  0x1e   :  { %450 = vmatpush3.bf16.msra.mxu0 %v513_v3  ;;  %470 = vmatpush3.bf16.msra.mxu1 %v521_v8 }
  0x1f   :  { %451 = vmatprep.subr.bf16.mxu0 %v586_v0  ;;  %471 = vmatprep.subr.bf16.mxu1 %v586_v0 }
  0x22   :  { %452 = vmatpush3.bf16.msra.mxu0 %v514_v5  ;;  %472 = vmatpush3.bf16.msra.mxu1 %v522_v10 }
  0x23   :  { %453 = vmatprep.subr.bf16.mxu0 %v586_v0  ;;  %473 = vmatprep.subr.bf16.mxu1 %v586_v0 }
  0x26   :  { %454 = vmatpush3.bf16.msra.mxu0 %v515_v7  ;;  %474 = vmatpush3.bf16.msra.mxu1 %v523_v12 }
  0x27   :  { %455 = vmatprep.subr.bf16.mxu0 %v586_v0  ;;  %475 = vmatprep.subr.bf16.mxu1 %v586_v0 }
  0x2a   :  { %456 = vmatpush3.bf16.msra.mxu0 %v516_v9  ;;  %476 = vmatpush3.bf16.msra.mxu1 %v524_v14 }
  0x2b   :  { %457 = vmatprep.subr.bf16.mxu0 %v586_v0  ;;  %477 = vmatprep.subr.bf16.mxu1 %v586_v0 }
  0x2e   :  { %458 = vmatpush3.bf16.msra.mxu0 %v517_v11  ;;  %478 = vmatpush3.bf16.msra.mxu1 %v525_v16 }
  0x2f   :  { %459 = vmatprep.subr.bf16.mxu0 %v586_v0  ;;  %479 = vmatprep.subr.bf16.mxu1 %v586_v0 }
  0x32   :  { %460 = vmatpush3.bf16.msra.mxu0 %v518_v13  ;;  %480 = vmatpush3.bf16.msra.mxu1 %v526_v17 }
  0x33   :  { %485 = vmatprep.subr.bf16.mxu0 %v586_v0 }
  0x35   :  { %462 = vmatmul.mubr.bf16.vlgmr.msra.gmra.mrb[0].mxu0 %v30_v15 }
  0x36   :  { %501 = vmatprep.mubr.msk.bf16.mxu0 %vm587_vm0, %v586_v0  ;;  %486 = vmatpush3.bf16.msra.mxu0 %v527_v18 }
  0x37   :  { %487 = vmatprep.subr.bf16.mxu0 %v586_v0 }
  0x3a   :  { %488 = vmatpush3.bf16.msra.mxu0 %v528_v19 }
  0x3b   :  { %489 = vmatprep.subr.bf16.mxu0 %v586_v0 }
  0x3e   :  { %490 = vmatpush3.bf16.msra.mxu0 %v529_v20 }
  0x3f   :  { %491 = vmatprep.subr.bf16.mxu0 %v586_v0 }
  0x42   :  { %492 = vmatpush3.bf16.msra.mxu0 %v530_v21 }
  0x43   :  { %493 = vmatprep.subr.bf16.mxu0 %v586_v0 }
  0x46   :  { %494 = vmatpush3.bf16.msra.mxu0 %v531_v22 }
  0x47   :  { %495 = vmatprep.subr.bf16.mxu0 %v586_v0 }
  0x4a   :  { %496 = vmatpush3.bf16.msra.mxu0 %v532_v23 }
  0x4b   :  { %497 = vmatprep.subr.bf16.mxu0 %v586_v0 }
  0x4e   :  { %498 = vmatpush3.bf16.msra.mxu0 %v533_v32 }
  0x4f   :  { %499 = vmatprep.subr.bf16.mxu0 %v586_v0 }
  0x52   :  { %500 = vmatpush3.bf16.msra.mxu0 %v534_v33 }
 0x108   :  { %v136_v25 = vpop.f32.mrb[0].mxu0 }
 0x109   :  { %v137_v26 = vadd.f32 %v389_v24, %v136_v25  ;;  %v463_v27 = vpop.f32.mrb[1].mxu0 }
 0x10a   :  { %v139_v28 = vpop.f32.mrb[2].mxu0 }
 0x10b   :  { %v142_v29 = vmax.f32 %v137_v26, 0.0  ;;  %v464_v30 = vpop.f32.mrb[3].mxu0 }
 0x10d   :  { %v143_v31 = vpack.c.bf16 %v142_v29, %v142_v29 }
 0x10f   :  { %482 = vmatmul.mubr.bf16.vlgmr.msra.gmra.mrb[0].mxu1 %v143_v31 }
 0x1e2   :  { %v251_v35 = vpop.f32.mrb[0].mxu1 }
 0x1e3   :  { %v252_v36 = vadd.f32 %v399_v34, %v251_v35  ;;  %v483_v37 = vpop.f32.mrb[1].mxu1 }
 0x1e4   :  { %v254_v38 = vpop.f32.mrb[2].mxu1 }
 0x1e5   :  { %v257_v39 = vmax.f32 %v252_v36, 0.0  ;;  %v484_v40 = vpop.f32.mrb[3].mxu1 }
 0x1e7   :  { %v258_v41 = vpack.c.bf16 %v257_v39, %v257_v39 }
 0x1e9   :  { %502 = vmatmul.mubr.bf16.vlgmr.msra.gmra.mrb[4].mxu0 %v258_v41 }
 0x2bc   :  { %v366_v43 = vpop.f32.mrb[4].mxu0 }
 0x2bd   :  { %v367_v44 = vadd.f32 %v409_v42, %v366_v43  ;;  %v503_v45 = vpop.f32.mrb[5].mxu0 }
 0x2be   :  { %v369_v46 = vpop.f32.mrb[6].mxu0 }
 0x2bf   :  { %v372_v47 = vmax.f32 %v367_v44, 0.0  ;;  %v504_v48 = vpop.f32.mrb[7].mxu0 }
 0x2c1   :  { %373 = vst [vmem:[#allocation5] sm:$0xff] %v372_v47 }
 0x2c2   :  { %568 = shalt.err (!%p565_p12)
}
 0x2c3   :  { %s569_s2 = scalar_lea.hbm %s678_s3, 128 }
 0x2c4   :  { %p570_p13 = scmp.ne.s32.totalorder %s678_s3, %s569_s2  ;;  %p573_p0 = scmp.lt.u32.totalorder %s569_s2, %s678_s3 }
 0x2c6   :  { %p575_p1 = pnand %p573_p0, %p570_p13 }
 0x2c8   :  { %578 = shalt.err (!%p575_p1)
}
 0x2c9   :  { %383 = dma.vmem_to_hbm [thread:$0]  %s381_s6, 128, %s678_s3, [#allocation4]  }
 0x2ca   :  { %581 = dma.done.wait [#allocation4], 128  }
 0x2cb   :  { %582 = vsyncadd [#allocation4], 4294967168 }
 0x2cc   :  { %387 = vsyncpa [#allocation3], 1 }
 0x2cd   :  { %388 = vsyncpa [#allocation4], 1 }

</bundles_post_ra>
